<compile_context>
chip_gen: v6e
topology: v6e:2x2x1
jax: 0.10.0
libtpu: 0.0.40
codegen_flags: <defaults>
</compile_context>

<pallas_src>
import jax
import jax.numpy as jnp
from jax.experimental import pallas as pl
from jax.experimental.pallas import tpu as pltpu


def _round_up(x, m):
    return ((x + m - 1) // m) * m


def gmf_kernel(uidx_ref, iidx_ref, utab_ref, itab_ref, w_ref, b_ref, out_ref):
    # uidx_ref, iidx_ref: (1, TB)   int32  batch tile of user / item ids (VMEM)
    # utab_ref:           (F, Upad) f32    transposed user table, VMEM-resident
    # itab_ref:           (F, Ipad) f32    transposed item table, VMEM-resident
    # w_ref:              (F, 1)    f32    predict-layer weight column
    # b_ref:              (1,)      f32    predict-layer bias (SMEM scalar)
    # out_ref:            (1, TB)   f32    lane-dense predictions for this tile
    f, upad = utab_ref.shape
    _, ipad = itab_ref.shape
    _, tb = uidx_ref.shape

    # Gather-as-matmul: onehot[u, j] = (u == idx[j]); table^T @ onehot selects
    # the embedding row of each batch element, already transposed to (F, TB).
    u_onehot = (jax.lax.broadcasted_iota(jnp.int32, (upad, tb), 0)
                == uidx_ref[...]).astype(jnp.float32)               # (Upad, TB)
    i_onehot = (jax.lax.broadcasted_iota(jnp.int32, (ipad, tb), 0)
                == iidx_ref[...]).astype(jnp.float32)               # (Ipad, TB)

    uT = jnp.dot(utab_ref[...], u_onehot,
                 preferred_element_type=jnp.float32)                # (F, TB)
    vT = jnp.dot(itab_ref[...], i_onehot,
                 preferred_element_type=jnp.float32)                # (F, TB)

    # GMF head: elementwise product, weighted sum over factors (sublane
    # reduce on the XLU), plus scalar bias.  VPU/XLU only -- no (F,1) matmul.
    prod = uT * vT * w_ref[...]                                     # (F, TB)
    out_ref[...] = jnp.sum(prod, axis=0, keepdims=True) + b_ref[0]  # (1, TB)


def gmf_forward(params, user, item, *, block_batch=512):
    """GMF forward.  user/item: (B,) int indices.  Returns (B,) f32."""
    embed_user_w, embed_item_w, predict_w, predict_b = params
    num_user, num_factor = embed_user_w.shape
    num_item, _ = embed_item_w.shape
    batch = user.shape[0]

    # Batch tiling: TB multiple of 128 (lane-dense), clamped to the padded
    # batch.  Keep TB * (Upad + Ipad) * 4B of one-hot temporaries well under
    # the scoped VMEM limit (32 MiB default; v7x has 64 MiB total per TC).
    tb = min(block_batch, _round_up(batch, 128))
    b_pad = _round_up(batch, tb)
    num_tiles = b_pad // tb

    # Indices as lane-dense int32 rows (padded rows point at row 0; discarded).
    user_p = jnp.zeros((1, b_pad), jnp.int32).at[0, :batch].set(
        user.astype(jnp.int32))
    item_p = jnp.zeros((1, b_pad), jnp.int32).at[0, :batch].set(
        item.astype(jnp.int32))

    # Transposed, lane-padded tables: read once from HBM, resident across grid.
    upad = _round_up(num_user, 128)
    ipad = _round_up(num_item, 128)
    utab = jnp.zeros((num_factor, upad), jnp.float32).at[:, :num_user].set(
        embed_user_w.T.astype(jnp.float32))
    itab = jnp.zeros((num_factor, ipad), jnp.float32).at[:, :num_item].set(
        embed_item_w.T.astype(jnp.float32))

    w_col = predict_w.reshape(num_factor, 1).astype(jnp.float32)    # (F, 1)
    b_vec = predict_b.reshape(1).astype(jnp.float32)                # (1,)

    out = pl.pallas_call(
        gmf_kernel,
        out_shape=jax.ShapeDtypeStruct((1, b_pad), jnp.float32),
        grid=(num_tiles,),
        in_specs=[
            pl.BlockSpec((1, tb), lambda i: (0, i)),                # user ids
            pl.BlockSpec((1, tb), lambda i: (0, i)),                # item ids
            pl.BlockSpec((num_factor, upad), lambda i: (0, 0)),     # user table
            pl.BlockSpec((num_factor, ipad), lambda i: (0, 0)),     # item table
            pl.BlockSpec((num_factor, 1), lambda i: (0, 0)),        # weight
            pl.BlockSpec(memory_space=pltpu.MemorySpace.SMEM),      # bias
        ],
        out_specs=pl.BlockSpec((1, tb), lambda i: (0, i)),
        compiler_params=pltpu.CompilerParams(
            dimension_semantics=("parallel",)),
    )(user_p, item_p, utab, itab, w_col, b_vec)

    return out[0, :batch]


def init_gmf_params(key, num_user, num_item, num_factor):
    """Deterministic re-implementation of GMF._init_weight_ (no pretrained model)."""
    k_user, k_item, k_w = jax.random.split(key, 3)
    # nn.init.normal_(std=0.01) on both embedding tables
    embed_user_w = 0.01 * jax.random.normal(k_user, (num_user, num_factor), jnp.float32)
    embed_item_w = 0.01 * jax.random.normal(k_item, (num_item, num_factor), jnp.float32)
    # kaiming_uniform_(a=1, nonlinearity='sigmoid') -> gain=1,
    # bound = gain * sqrt(3 / fan_in), fan_in = num_factor
    bound = jnp.sqrt(3.0 / num_factor)
    predict_w = jax.random.uniform(k_w, (1, num_factor), jnp.float32,
                                   minval=-bound, maxval=bound)
    predict_b = jnp.zeros((1,), jnp.float32)
    return embed_user_w, embed_item_w, predict_w, predict_b


if __name__ == "__main__":
    num_user, num_item, num_factor = 64, 64, 32
    batch = 8

    key = jax.random.PRNGKey(0)
    k_params, k_user_idx, k_item_idx = jax.random.split(key, 3)

    params = init_gmf_params(k_params, num_user, num_item, num_factor)
    user = jax.random.randint(k_user_idx, (batch,), 0, num_user, dtype=jnp.int32)
    item = jax.random.randint(k_item_idx, (batch,), 0, num_item, dtype=jnp.int32)

    pred = gmf_forward(params, user, item)
    pred = jax.block_until_ready(pred)

    # Reference check in plain JAX.
    eu, ei, pw, pb = params
    ref = (jnp.take(eu, user, axis=0) * jnp.take(ei, item, axis=0)) @ pw.T + pb
    ref = ref.reshape(-1)
    assert pred.shape == (batch,)
    assert jnp.allclose(pred, ref, atol=1e-6), (pred, ref)

    print("KERNEL_OK")
</pallas_src>

<mosaic_0001>
module attributes {stable_mosaic.version = 11 : i64} {
  func.func @gmf_kernel(%arg0: i32, %arg1: memref<1x128xi32, #tpu.memory_space<vmem>>, %arg2: memref<1x128xi32, #tpu.memory_space<vmem>>, %arg3: memref<32x128xf32, #tpu.memory_space<vmem>>, %arg4: memref<32x128xf32, #tpu.memory_space<vmem>>, %arg5: memref<32x1xf32, #tpu.memory_space<vmem>>, %arg6: memref<1xf32, #tpu.memory_space<smem>>, %arg7: memref<1x128xf32, #tpu.memory_space<vmem>>) attributes {dimension_semantics = [#tpu.dimension_semantics<parallel>], iteration_bounds = array<i64: 1>, scalar_prefetch = 0 : i64, scratch_operands = 0 : i64, tpu.core_type = #tpu.core_type<tc>, window_params = [{transform_indices = @transform_0, window_bounds = array<i64: 1, 128>}, {transform_indices = @transform_1, window_bounds = array<i64: 1, 128>}, {pipeline_mode = #tpu.pipeline_mode<synchronous>, transform_indices = @transform_2, window_bounds = array<i64: 32, 128>}, {pipeline_mode = #tpu.pipeline_mode<synchronous>, transform_indices = @transform_3, window_bounds = array<i64: 32, 128>}, {pipeline_mode = #tpu.pipeline_mode<synchronous>, transform_indices = @transform_4, window_bounds = array<i64: 32, 1>}, {transform_indices = @transform_5, window_bounds = array<i64: 1>}, {transform_indices = @transform_6, window_bounds = array<i64: 1, 128>}]} {
    %0 = tpu.iota {dimensions = array<i32: 0>} : vector<128x128xi32>
    %c0 = arith.constant 0 : index
    %c0_0 = arith.constant 0 : index
    %1 = vector.load %arg1[%c0, %c0_0] : memref<1x128xi32, #tpu.memory_space<vmem>>, vector<1x128xi32>
    %2 = vector.broadcast %1 : vector<1x128xi32> to vector<128x128xi32>
    %3 = arith.cmpi eq, %0, %2 : vector<128x128xi32>
    %4 = arith.extui %3 : vector<128x128xi1> to vector<128x128xi32>
    %5 = arith.sitofp %4 : vector<128x128xi32> to vector<128x128xf32>
    %6 = tpu.iota {dimensions = array<i32: 0>} : vector<128x128xi32>
    %c0_1 = arith.constant 0 : index
    %c0_2 = arith.constant 0 : index
    %7 = vector.load %arg2[%c0_1, %c0_2] : memref<1x128xi32, #tpu.memory_space<vmem>>, vector<1x128xi32>
    %8 = vector.broadcast %7 : vector<1x128xi32> to vector<128x128xi32>
    %9 = arith.cmpi eq, %6, %8 : vector<128x128xi32>
    %10 = arith.extui %9 : vector<128x128xi1> to vector<128x128xi32>
    %11 = arith.sitofp %10 : vector<128x128xi32> to vector<128x128xf32>
    %c0_3 = arith.constant 0 : index
    %c0_4 = arith.constant 0 : index
    %12 = vector.load %arg3[%c0_3, %c0_4] : memref<32x128xf32, #tpu.memory_space<vmem>>, vector<32x128xf32>
    %cst = arith.constant dense<0.000000e+00> : vector<32x128xf32>
    %13 = tpu.matmul %12, %5, %cst {dimension_numbers = #tpu.dot_dimension_numbers<[1], [0], [0], [1], [0, 0, 1, 1], [], []>} : vector<32x128xf32>, vector<128x128xf32>, vector<32x128xf32> -> vector<32x128xf32>
    %c0_5 = arith.constant 0 : index
    %c0_6 = arith.constant 0 : index
    %14 = vector.load %arg4[%c0_5, %c0_6] : memref<32x128xf32, #tpu.memory_space<vmem>>, vector<32x128xf32>
    %cst_7 = arith.constant dense<0.000000e+00> : vector<32x128xf32>
    %15 = tpu.matmul %14, %11, %cst_7 {dimension_numbers = #tpu.dot_dimension_numbers<[1], [0], [0], [1], [0, 0, 1, 1], [], []>} : vector<32x128xf32>, vector<128x128xf32>, vector<32x128xf32> -> vector<32x128xf32>
    %16 = arith.mulf %13, %15 : vector<32x128xf32>
    %c0_8 = arith.constant 0 : index
    %c0_9 = arith.constant 0 : index
    %17 = vector.load %arg5[%c0_8, %c0_9] : memref<32x1xf32, #tpu.memory_space<vmem>>, vector<32x1xf32>
    %18 = vector.broadcast %17 : vector<32x1xf32> to vector<32x128xf32>
    %19 = arith.mulf %16, %18 : vector<32x128xf32>
    %cst_10 = arith.constant dense<0.000000e+00> : vector<128xf32>
    %20 = vector.multi_reduction <add>, %19, %cst_10 [0] : vector<32x128xf32> to vector<128xf32>
    %21 = vector.shape_cast %20 : vector<128xf32> to vector<1x128xf32>
    %c0_11 = arith.constant 0 : index
    %22 = memref.load %arg6[%c0_11] : memref<1xf32, #tpu.memory_space<smem>>
    %23 = vector.broadcast %22 : f32 to vector<1x128xf32>
    %24 = arith.addf %21, %23 : vector<1x128xf32>
    %c0_12 = arith.constant 0 : index
    %c0_13 = arith.constant 0 : index
    %25 = vector.load %arg7[%c0_12, %c0_13] : memref<1x128xf32, #tpu.memory_space<vmem>>, vector<1x128xf32>
    tpu.vector_store %arg7[%c0_12, %c0_13], %24 {strides = array<i32>} : memref<1x128xf32, #tpu.memory_space<vmem>>, vector<1x128xf32>,
    return
  }
  func.func @transform_0(%arg0: i32) -> (i32, i32) {
    %c0_i32 = arith.constant 0 : i32
    %c0_i32_0 = arith.constant 0 : i32
    return %c0_i32, %arg0 : i32, i32
  }
  func.func @transform_1(%arg0: i32) -> (i32, i32) {
    %c0_i32 = arith.constant 0 : i32
    %c0_i32_0 = arith.constant 0 : i32
    return %c0_i32, %arg0 : i32, i32
  }
  func.func @transform_2(%arg0: i32) -> (i32, i32) {
    %c0_i32 = arith.constant 0 : i32
    %c0_i32_0 = arith.constant 0 : i32
    %c0_i32_1 = arith.constant 0 : i32
    return %c0_i32, %c0_i32_0 : i32, i32
  }
  func.func @transform_3(%arg0: i32) -> (i32, i32) {
    %c0_i32 = arith.constant 0 : i32
    %c0_i32_0 = arith.constant 0 : i32
    %c0_i32_1 = arith.constant 0 : i32
    return %c0_i32, %c0_i32_0 : i32, i32
  }
  func.func @transform_4(%arg0: i32) -> (i32, i32) {
    %c0_i32 = arith.constant 0 : i32
    %c0_i32_0 = arith.constant 0 : i32
    %c0_i32_1 = arith.constant 0 : i32
    return %c0_i32, %c0_i32_0 : i32, i32
  }
  func.func @transform_5(%arg0: i32) -> i32 {
    %c0_i32 = arith.constant 0 : i32
    %c0_i32_0 = arith.constant 0 : i32
    return %c0_i32 : i32
  }
  func.func @transform_6(%arg0: i32) -> (i32, i32) {
    %c0_i32 = arith.constant 0 : i32
    %c0_i32_0 = arith.constant 0 : i32
    return %c0_i32, %arg0 : i32, i32
  }
}

</mosaic_0001>

<bundles_post_ra>
// kernel: tpu_custom_call.1
= control target key start
LH: loop header
LB: loop body
LE: loop exit
PB: predicated region body
PF: predicated region fallthrough
CT: control target
= control target key end

     0   :  { %12 = vsyncpa [#allocation4], 0  ;;  %s833_s0 = inlined_call_operand.vmem [shape: s32[1,128], index: 0, kind: input, shape index: {}]   ;;  %s834_s1 = inlined_call_operand.vmem [shape: s32[1,128], index: 1, kind: input, shape index: {}]   ;;  %s835_s2 = inlined_call_operand.vmem [shape: f32[32,128], index: 2, kind: input, shape index: {}]   ;;  %s836_s3 = inlined_call_operand.hbm [shape: f32[32,128], index: 3, kind: input, shape index: {}]   ;;  %s837_s4 = inlined_call_operand.vmem [shape: f32[32,1], index: 4, kind: input, shape index: {}]   ;;  %s838_s5 = inlined_call_operand.<no memory space> [shape: f32[1], index: 5, kind: input, shape index: {}]   ;;  %s839_s6 = inlined_call_operand.hbm [shape: f32[1,128], index: 6, kind: output, shape index: {}]  }
   0x1   :  { %13 = vsyncpa [#allocation5], 0  ;;  %s634_s21 = smov [#allocation3]  }
   0x2   :  { %s25_s22 = sshll.u32 %s634_s21, 4  ;;  %s26_s22 = int_to_ptr.vmem [resolvable:$true] %s25_s22 }
   0x3   :  { %s598_s23 = scalar_lea.vmem %s26_s22, 512  ;;  %p603_p1 = scmp.lt.s32.totalorder %s26_s22, %s26_s22 }
   0x4   :  { %p599_p0 = scmp.ne.s32.totalorder %s26_s22, %s598_s23  ;;  %p604_p2 = scmp.lt.s32.totalorder %s598_s23, %s598_s23 }
   0x6   :  { %p605_p3 = por %p604_p2, %p603_p1 }
   0x8   :  { %p606_p4 = pnand %p605_p3, %p599_p0 }
   0xa   :  { %609 = shalt.err (!%p606_p4)
}
   0xb   :  { %s635_s24 = smov 128   ;;  %s636_s25 = smov 8  }
   0xc   :  { %31 = dma.hbm_to_vmem [thread:$0]  %s836_s3, 512, %s26_s22, [#allocation4], %s635_s24, %s635_s24, %s636_s25  }
   0xd   :  { %630 = dma.done.wait [#allocation4], 512  }
   0xe   :  { %631 = vsyncadd [#allocation4], 4294966784  ;;  %v39_v0 = vlaneseq  ;;  %v637_v1 = vmov 0   ;;  %v686_v6 = vld [vmem:[%s833_s0] ss:$0 sm:$0xff]  ;;  %v638_v9 = vmov 1.0   ;;  %v382_v61 = vstv %s838_s5 }
   0xf   :  { %588 = vset.pattern.permute.xlu0 %v637_v1  ;;  %589 = vset.pattern.permute.xlu1 %v637_v1  ;;  %v691_v7 = vld [vmem:[%s834_s1] ss:$0 sm:$0xff]  ;;  %v163_v23 = vld [vmem:[%s835_s2 + $0x8] sm:$0xff]  ;;  %v164_v25 = vld [vmem:[%s835_s2 + $0x10] sm:$0xff]  ;;  %s639_s21 = smov [#allocation6]  }
  0x10   :  { %v678_v2 = vshrl.u32 %v39_v0, 7  ;;  %v162_v21 = vld [vmem:[%s835_s2] sm:$0xff]  ;;  %v252_v24 = vld [vmem:[#allocation3 + $0x8] sm:$0xff]  ;;  %v253_v26 = vld [vmem:[#allocation3 + $0x10] sm:$0xff]  ;;  %s391_s22 = sshll.u32 %s639_s21, 4  ;;  %s392_s22 = int_to_ptr.vmem [resolvable:$true] %s391_s22 }
  0x11   :  { %v251_v22 = vld [vmem:[#allocation3] sm:$0xff]  ;;  %538 = vmatprep.mubr.f32.mxu0 %v162_v21  ;;  %v346_v28 = vld [vmem:[%s837_s4 + $0x10] sm:$0xff]  ;;  %v165_v29 = vld [vmem:[%s835_s2 + $0x18] sm:$0xff]  ;;  %s610_s23 = scalar_lea.vmem %s392_s22, 16  ;;  %s614_s24 = scalar_lea.vmem %s392_s22, 32 }
  0x12   :  { %v55_v3 = vadd.s32 120, %v678_v2  ;;  %v54_v4 = vadd.s32 112, %v678_v2  ;;  %v53_v5 = vadd.s32 104, %v678_v2  ;;  %v52_v8 = vadd.s32 96, %v678_v2  ;;  %576 = vmatprep.mubr.f32.mxu1 %v251_v22  ;;  %v344_v27 = vld [vmem:[%s837_s4] sm:$0xff]  ;;  %v254_v30 = vld [vmem:[#allocation3 + $0x18] sm:$0xff]  ;;  %360 = vperm.xlu1 %589, %v346_v28   ;;  %p611_p5 = scmp.ne.s32.totalorder %s392_s22, %s610_s23  ;;  %p615_p6 = scmp.lt.s32.totalorder %s392_s22, %s392_s22 }
  0x13   :  { %v51_v10 = vadd.s32 88, %v678_v2  ;;  %v50_v11 = vadd.s32 80, %v678_v2  ;;  %v49_v12 = vadd.s32 72, %v678_v2  ;;  %v48_v13 = vadd.s32 64, %v678_v2  ;;  %350 = vperm.xlu0 %588, %v344_v27   ;;  %v345_v31 = vld [vmem:[%s837_s4 + $0x8] sm:$0xff]  ;;  %v347_v32 = vld [vmem:[%s837_s4 + $0x18] sm:$0xff]  ;;  %p616_p7 = scmp.lt.s32.totalorder %s614_s24, %s610_s23 }
  0x14   :  { %vm76_vm0 = vcmp.eq.s32.totalorder %v55_v3, %v686_v6  ;;  %vm129_vm1 = vcmp.eq.s32.totalorder %v55_v3, %v691_v7  ;;  %vm75_vm2 = vcmp.eq.s32.totalorder %v54_v4, %v686_v6  ;;  %vm128_vm3 = vcmp.eq.s32.totalorder %v54_v4, %v691_v7 }
  0x15   :  { %506 = vmatprep.subr.msk.mxu0 %vm76_vm0, %v638_v9  ;;  %544 = vmatprep.subr.msk.mxu1 %vm129_vm1, %v638_v9  ;;  %vm74_vm4 = vcmp.eq.s32.totalorder %v53_v5, %v686_v6  ;;  %vm127_vm5 = vcmp.eq.s32.totalorder %v53_v5, %v691_v7  ;;  %vm73_vm6 = vcmp.eq.s32.totalorder %v52_v8, %v686_v6  ;;  %v47_v14 = vadd.s32 56, %v678_v2  ;;  %p617_p8 = por %p616_p7, %p615_p6 }
  0x16   :  { %507 = vmatpush3.msk.msra.mxu0 %vm76_vm0, %v638_v9  ;;  %545 = vmatpush3.msk.msra.mxu1 %vm129_vm1, %v638_v9  ;;  %vm126_vm7 = vcmp.eq.s32.totalorder %v52_v8, %v691_v7  ;;  %vm72_vm8 = vcmp.eq.s32.totalorder %v51_v10, %v686_v6  ;;  %vm125_vm9 = vcmp.eq.s32.totalorder %v51_v10, %v691_v7  ;;  %v46_v15 = vadd.s32 48, %v678_v2 }
  0x17   :  { %508 = vmatprep.subr.msk.mxu0 %vm75_vm2, %v638_v9  ;;  %546 = vmatprep.subr.msk.mxu1 %vm128_vm3, %v638_v9  ;;  %vm71_vm10 = vcmp.eq.s32.totalorder %v50_v11, %v686_v6  ;;  %vm124_vm11 = vcmp.eq.s32.totalorder %v50_v11, %v691_v7  ;;  %vm70_vm12 = vcmp.eq.s32.totalorder %v49_v12, %v686_v6  ;;  %v45_v16 = vadd.s32 40, %v678_v2  ;;  %p618_p9 = pnand %p617_p8, %p611_p5 }
  0x18   :  { %509 = vmatpush3.msk.msra.mxu0 %vm75_vm2, %v638_v9  ;;  %547 = vmatpush3.msk.msra.mxu1 %vm128_vm3, %v638_v9  ;;  %vm123_vm13 = vcmp.eq.s32.totalorder %v49_v12, %v691_v7  ;;  %vm69_vm14 = vcmp.eq.s32.totalorder %v48_v13, %v686_v6  ;;  %vm122_vm15 = vcmp.eq.s32.totalorder %v48_v13, %v691_v7  ;;  %v44_v17 = vadd.s32 32, %v678_v2 }
  0x19   :  { %510 = vmatprep.subr.msk.mxu0 %vm74_vm4, %v638_v9  ;;  %548 = vmatprep.subr.msk.mxu1 %vm127_vm5, %v638_v9  ;;  %vm68_vm0 = vcmp.eq.s32.totalorder %v47_v14, %v686_v6  ;;  %vm121_vm1 = vcmp.eq.s32.totalorder %v47_v14, %v691_v7  ;;  %vm67_vm2 = vcmp.eq.s32.totalorder %v46_v15, %v686_v6  ;;  %v43_v18 = vadd.s32 24, %v678_v2 }
  0x1a   :  { %511 = vmatpush3.msk.msra.mxu0 %vm74_vm4, %v638_v9  ;;  %549 = vmatpush3.msk.msra.mxu1 %vm127_vm5, %v638_v9  ;;  %vm120_vm3 = vcmp.eq.s32.totalorder %v46_v15, %v691_v7  ;;  %vm66_vm4 = vcmp.eq.s32.totalorder %v45_v16, %v686_v6  ;;  %vm119_vm5 = vcmp.eq.s32.totalorder %v45_v16, %v691_v7  ;;  %v42_v19 = vadd.s32 16, %v678_v2 }
  0x1b   :  { %512 = vmatprep.subr.msk.mxu0 %vm73_vm6, %v638_v9  ;;  %550 = vmatprep.subr.msk.mxu1 %vm126_vm7, %v638_v9  ;;  %v41_v20 = vadd.s32 8, %v678_v2 }
  0x1c   :  { %513 = vmatpush3.msk.msra.mxu0 %vm73_vm6, %v638_v9  ;;  %551 = vmatpush3.msk.msra.mxu1 %vm126_vm7, %v638_v9  ;;  %vm65_vm6 = vcmp.eq.s32.totalorder %v44_v17, %v686_v6  ;;  %vm118_vm7 = vcmp.eq.s32.totalorder %v44_v17, %v691_v7 }
  0x1d   :  { %514 = vmatprep.subr.msk.mxu0 %vm72_vm8, %v638_v9  ;;  %552 = vmatprep.subr.msk.mxu1 %vm125_vm9, %v638_v9 }
  0x1e   :  { %515 = vmatpush3.msk.msra.mxu0 %vm72_vm8, %v638_v9  ;;  %553 = vmatpush3.msk.msra.mxu1 %vm125_vm9, %v638_v9  ;;  %vm64_vm8 = vcmp.eq.s32.totalorder %v43_v18, %v686_v6  ;;  %vm117_vm9 = vcmp.eq.s32.totalorder %v43_v18, %v691_v7 }
  0x1f   :  { %516 = vmatprep.subr.msk.mxu0 %vm71_vm10, %v638_v9  ;;  %554 = vmatprep.subr.msk.mxu1 %vm124_vm11, %v638_v9 }
  0x20   :  { %517 = vmatpush3.msk.msra.mxu0 %vm71_vm10, %v638_v9  ;;  %555 = vmatpush3.msk.msra.mxu1 %vm124_vm11, %v638_v9  ;;  %vm63_vm10 = vcmp.eq.s32.totalorder %v42_v19, %v686_v6  ;;  %vm116_vm11 = vcmp.eq.s32.totalorder %v42_v19, %v691_v7 }
  0x21   :  { %518 = vmatprep.subr.msk.mxu0 %vm70_vm12, %v638_v9  ;;  %556 = vmatprep.subr.msk.mxu1 %vm123_vm13, %v638_v9 }
  0x22   :  { %519 = vmatpush3.msk.msra.mxu0 %vm70_vm12, %v638_v9  ;;  %557 = vmatpush3.msk.msra.mxu1 %vm123_vm13, %v638_v9  ;;  %vm62_vm12 = vcmp.eq.s32.totalorder %v41_v20, %v686_v6  ;;  %vm115_vm13 = vcmp.eq.s32.totalorder %v41_v20, %v691_v7 }
  0x23   :  { %520 = vmatprep.subr.msk.mxu0 %vm69_vm14, %v638_v9  ;;  %558 = vmatprep.subr.msk.mxu1 %vm122_vm15, %v638_v9 }
  0x24   :  { %521 = vmatpush3.msk.msra.mxu0 %vm69_vm14, %v638_v9  ;;  %559 = vmatpush3.msk.msra.mxu1 %vm122_vm15, %v638_v9  ;;  %vm61_vm14 = vcmp.eq.s32.totalorder %v678_v2, %v686_v6  ;;  %vm114_vm15 = vcmp.eq.s32.totalorder %v678_v2, %v691_v7 }
  0x25   :  { %522 = vmatprep.subr.msk.mxu0 %vm68_vm0, %v638_v9  ;;  %560 = vmatprep.subr.msk.mxu1 %vm121_vm1, %v638_v9 }
  0x26   :  { %523 = vmatpush3.msk.msra.mxu0 %vm68_vm0, %v638_v9  ;;  %561 = vmatpush3.msk.msra.mxu1 %vm121_vm1, %v638_v9 }
  0x27   :  { %524 = vmatprep.subr.msk.mxu0 %vm67_vm2, %v638_v9  ;;  %562 = vmatprep.subr.msk.mxu1 %vm120_vm3, %v638_v9 }
  0x28   :  { %525 = vmatpush3.msk.msra.mxu0 %vm67_vm2, %v638_v9  ;;  %563 = vmatpush3.msk.msra.mxu1 %vm120_vm3, %v638_v9 }
  0x29   :  { %526 = vmatprep.subr.msk.mxu0 %vm66_vm4, %v638_v9  ;;  %564 = vmatprep.subr.msk.mxu1 %vm119_vm5, %v638_v9 }
  0x2a   :  { %527 = vmatpush3.msk.msra.mxu0 %vm66_vm4, %v638_v9  ;;  %565 = vmatpush3.msk.msra.mxu1 %vm119_vm5, %v638_v9 }
  0x2b   :  { %528 = vmatprep.subr.msk.mxu0 %vm65_vm6, %v638_v9  ;;  %566 = vmatprep.subr.msk.mxu1 %vm118_vm7, %v638_v9 }
  0x2c   :  { %529 = vmatpush3.msk.msra.mxu0 %vm65_vm6, %v638_v9  ;;  %567 = vmatpush3.msk.msra.mxu1 %vm118_vm7, %v638_v9 }
  0x2d   :  { %530 = vmatprep.subr.msk.mxu0 %vm64_vm8, %v638_v9  ;;  %568 = vmatprep.subr.msk.mxu1 %vm117_vm9, %v638_v9 }
  0x2e   :  { %531 = vmatpush3.msk.msra.mxu0 %vm64_vm8, %v638_v9  ;;  %569 = vmatpush3.msk.msra.mxu1 %vm117_vm9, %v638_v9 }
  0x2f   :  { %532 = vmatprep.subr.msk.mxu0 %vm63_vm10, %v638_v9  ;;  %570 = vmatprep.subr.msk.mxu1 %vm116_vm11, %v638_v9 }
  0x30   :  { %533 = vmatpush3.msk.msra.mxu0 %vm63_vm10, %v638_v9  ;;  %571 = vmatpush3.msk.msra.mxu1 %vm116_vm11, %v638_v9 }
  0x31   :  { %534 = vmatprep.subr.msk.mxu0 %vm62_vm12, %v638_v9  ;;  %572 = vmatprep.subr.msk.mxu1 %vm115_vm13, %v638_v9 }
  0x32   :  { %535 = vmatpush3.msk.msra.mxu0 %vm62_vm12, %v638_v9  ;;  %573 = vmatpush3.msk.msra.mxu1 %vm115_vm13, %v638_v9 }
  0x33   :  { %536 = vmatprep.subr.msk.mxu0 %vm61_vm14, %v638_v9  ;;  %574 = vmatprep.subr.msk.mxu1 %vm114_vm15, %v638_v9 }
  0x34   :  { %537 = vmatpush3.msk.msra.mxu0 %vm61_vm14, %v638_v9  ;;  %575 = vmatpush3.msk.msra.mxu1 %vm114_vm15, %v638_v9 }
  0x35   :  { %539 = vmatmul.mubr.f32.vlgmr.msra.gmra.mxu0 %v163_v23  ;;  %577 = vmatmul.mubr.f32.vlgmr.msra.gmra.mxu1 %v252_v24 }
  0x36   :  { %541 = vmatprep.mubr.f32.mxu0 %v164_v25  ;;  %579 = vmatprep.mubr.f32.mxu1 %v253_v26 }
  0x37   :  { %355 = vperm.xlu0 %588, %v345_v31   ;;  %365 = vperm.xlu1 %589, %v347_v32  }
  0x39   :  { %542 = vmatmul.mubr.f32.gmra.mxu0 %v165_v29  ;;  %580 = vmatmul.mubr.f32.gmra.mxu1 %v254_v30 }
  0x8d   :  { %v361_v36 = vpop.permute.xlu1 %360 }
  0x8e   :  { %v351_v33 = vpop.permute.xlu0 %350 }
  0xb2   :  { %v356_v40 = vpop.permute.xlu0 %355  ;;  %v366_v50 = vpop.permute.xlu1 %365 }
  0xf5   :  { %v540_v34 = vpop.f32.mrf.mxu0  ;;  %v578_v35 = vpop.f32.mrf.mxu1 }
  0xf6   :  { %v341_v39 = vmul.f32 %v578_v35, %v540_v34 }
  0xf7   :  { %v232_v37 = vpop.f32.mrf.mxu0  ;;  %v321_v38 = vpop.f32.mrf.mxu1 }
  0xf8   :  { %v340_v41 = vmul.f32 %v321_v38, %v232_v37  ;;  %v369_v47 = vmul.f32 %v356_v40, %v341_v39 }
  0xf9   :  { %v543_v42 = vpop.f32.mrf.mxu0  ;;  %v581_v43 = vpop.f32.mrf.mxu1 }
  0xfa   :  { %v368_v44 = vmul.f32 %v351_v33, %v340_v41  ;;  %v343_v48 = vmul.f32 %v581_v43, %v543_v42 }
  0xfb   :  { %v242_v45 = vpop.f32.mrf.mxu0  ;;  %v331_v46 = vpop.f32.mrf.mxu1 }
  0xfc   :  { %v342_v49 = vmul.f32 %v331_v46, %v242_v45  ;;  %v372_v51 = vadd.f32 %v369_v47, %v368_v44  ;;  %v371_v53 = vmul.f32 %v366_v50, %v343_v48 }
  0xfe   :  { %v370_v52 = vmul.f32 %v361_v36, %v342_v49 }
 0x100   :  { %v373_v54 = vadd.f32 %v372_v51, %v370_v52 }
 0x102   :  { %v374_v55 = vadd.f32 %v373_v54, %v371_v53 }
 0x104   :  { %v375_v56 = vrot.slane %v374_v55, 4 }
 0x106   :  { %v376_v57 = vadd.f32 %v375_v56, %v374_v55 }
 0x108   :  { %v377_v58 = vrot.slane %v376_v57, 2 }
 0x10a   :  { %v378_v59 = vadd.f32 %v377_v58, %v376_v57 }
 0x10c   :  { %v379_v60 = vrot.slane %v378_v59, 1 }
 0x10e   :  { %v380_v62 = vadd.f32 %v379_v60, %v378_v59 }
 0x110   :  { %v383_v63 = vadd.f32 %v382_v61, %v380_v62 }
 0x112   :  { %384 = vst [vmem:[#allocation6] sm:$0x1] %v383_v63 }
 0x113   :  { %621 = shalt.err (!%p618_p9)
}
 0x114   :  { %394 = dma.vmem_to_hbm [thread:$0]  %s392_s22, 16, %s839_s6, [#allocation5]  }
 0x115   :  { %632 = dma.done.wait [#allocation5], 16  }
 0x116   :  { %633 = vsyncadd [#allocation5], 4294967280 }
 0x117   :  { %398 = vsyncpa [#allocation4], 1 }
 0x118   :  { %399 = vsyncpa [#allocation5], 1 }

</bundles_post_ra>
